<compile_context>
chip_gen: v6e
topology: v6e:2x2x1
jax: 0.10.0
libtpu: 0.0.40
codegen_flags: <defaults>
</compile_context>

<pallas_src>
import functools

import jax
import jax.numpy as jnp
from jax.experimental import pallas as pl
from jax.experimental.pallas import tpu as pltpu

LANE = 128
DEFAULT_TILE_LANES = 256 * 1024   # 256K batch elements per grid step (~8 MiB dbl-buffered)


def _round_up(n, m):
    return ((n + m - 1) // m) * m


def _stable_sigmoid(v):
    # Exact, numerically stable sigmoid: exp runs on the EUP (idle slot at
    # memory-bound rates); no overflow for large |v|.
    z = jnp.exp(-jnp.abs(v))
    return jnp.where(v >= 0, 1.0 / (1.0 + z), z / (1.0 + z))


def bp_demo_kernel(p_ref, xt_ref, ot_ref):
    """p_ref: SMEM f32[11] packed params; xt_ref: (3, S_tile, 128); ot_ref: (S_tile, 128).

    Packed param layout: [w1_00, w1_01, w1_02, w1_10, w1_11, w1_12,
                          b1_0, b1_1, w2_00, w2_01, b2_0]
    with w1 = fc1.weight (2,3) and w2 = fc2.weight (1,2) in torch (out,in) form,
    so h_j = sum_k w1[j,k] * x_k + b1[j]  and  y = sum_j w2[0,j] * h_j + b2.
    """
    # Leading-axis views -> dense (S_tile, 128) tiles, full sublane occupancy.
    x0 = xt_ref[0]
    x1 = xt_ref[1]
    x2 = xt_ref[2]
    # fc1 (3 -> 2), unrolled on the VPU (scalar-from-SMEM broadcast * vector)
    h0 = _stable_sigmoid(p_ref[0] * x0 + p_ref[1] * x1 + p_ref[2] * x2 + p_ref[6])
    h1 = _stable_sigmoid(p_ref[3] * x0 + p_ref[4] * x1 + p_ref[5] * x2 + p_ref[7])
    # fc2 (2 -> 1)
    y = p_ref[8] * h0 + p_ref[9] * h1 + p_ref[10]
    ot_ref[...] = _stable_sigmoid(y).astype(ot_ref.dtype)


@functools.partial(jax.jit, static_argnames=("tile_lanes",))
def bp_demo_forward_channels_first(x_cf, w1, b1, w2, b2, tile_lanes=DEFAULT_TILE_LANES):
    """x_cf: (3, B) f32 (batch on the fast axis).  Returns (B, 1).

    This is the no-extra-relayout entry point: hot callers should keep their
    activations channels-first so no transpose pass over HBM is needed.
    """
    B = x_cf.shape[1]
    b128 = _round_up(B, LANE)          # pad only to a whole 128-lane group
    S = b128 // LANE                   # number of dense sublane rows overall

    # (3, B) -> (3, S, 128): free reshape after a minimal (<128 elems) pad.
    x3 = jnp.pad(x_cf.astype(jnp.float32), ((0, 0), (0, b128 - B))).reshape(3, S, LANE)

    # Sublane rows per grid step: multiple of 8 (dense vregs), or the full S
    # when the whole problem fits in one step (block == full dim is legal).
    s_tile = max(8, (tile_lanes // LANE) // 8 * 8)
    if S <= s_tile:
        s_tile = S

    # One packed parameter vector -> a single tiny SMEM input instead of 4 DMAs.
    params = jnp.concatenate([
        w1.reshape(-1), b1.reshape(-1), w2.reshape(-1), b2.reshape(-1)
    ]).astype(jnp.float32)                                             # (11,)

    out = pl.pallas_call(
        bp_demo_kernel,
        out_shape=jax.ShapeDtypeStruct((S, LANE), jnp.float32),
        grid=(pl.cdiv(S, s_tile),),                                    # edge block masked
        in_specs=[
            pl.BlockSpec(memory_space=pltpu.MemorySpace.SMEM),         # params
            pl.BlockSpec((3, s_tile, LANE), lambda i: (0, i, 0)),      # x (3, S_tile, 128)
        ],
        out_specs=pl.BlockSpec((s_tile, LANE), lambda i: (i, 0)),      # y (S_tile, 128)
        compiler_params=pltpu.CompilerParams(
            dimension_semantics=("parallel",),                         # 2x on v7x dual-TC
        ),
    )(params, x3)

    # Padded lanes (and any masked edge rows) are sliced away here.
    return out.reshape(-1)[:B].reshape(B, 1)


def bp_demo_forward(x, w1, b1, w2, b2, tile_lanes=DEFAULT_TILE_LANES):
    """Convenience wrapper matching the torch module's (B, 3) input layout.

    The transpose is a one-time relayout; for repeated/hot calls keep x
    channels-first and call bp_demo_forward_channels_first directly.
    """
    return bp_demo_forward_channels_first(
        x.astype(jnp.float32).T, w1, b1, w2, b2, tile_lanes=tile_lanes)


def bp_demo_reference(x, w1, b1, w2, b2):
    h = jax.nn.sigmoid(x @ w1.T + b1)
    return jax.nn.sigmoid(h @ w2.T + b2)


if __name__ == "__main__":
    # Parameters exactly as in the PyTorch module's weights_initialization():
    # fc1.weight = [[0.2,-0.3],[0.4,0.1],[-0.5,0.2]].t() -> (2,3), fc1.bias (2,)
    # fc2.weight = [[-0.3],[-0.2]].t() -> (1,2),          fc2.bias (1,)
    w1 = jnp.array([[0.2, 0.4, -0.5],
                    [-0.3, 0.1, 0.2]], dtype=jnp.float32)   # (2, 3)
    b1 = jnp.array([-0.4, 0.2], dtype=jnp.float32)          # (2,)
    w2 = jnp.array([[-0.3, -0.2]], dtype=jnp.float32)       # (1, 2)
    b2 = jnp.array([0.1], dtype=jnp.float32)                # (1,)

    key = jax.random.PRNGKey(0)

    # Case 1: the script's x = [1.0, 0, 1.0] plus 7 deterministic random rows.
    k1, k2 = jax.random.split(key)
    rand_rows = jax.random.normal(k1, (7, 3), dtype=jnp.float32)
    x0 = jnp.array([[1.0, 0.0, 1.0]], dtype=jnp.float32)
    x = jnp.concatenate([x0, rand_rows], axis=0)             # (8, 3)

    out = bp_demo_forward(x, w1, b1, w2, b2)
    out = jax.block_until_ready(out)
    ref = bp_demo_reference(x, w1, b1, w2, b2)
    assert out.shape == (8, 1), out.shape
    assert jnp.allclose(out, ref, atol=1e-6, rtol=1e-6), (out, ref)

    # Case 2: batch that is not a multiple of 128 (exercises pad + slice path).
    xb = jax.random.normal(k2, (300, 3), dtype=jnp.float32)
    outb = jax.block_until_ready(bp_demo_forward(xb, w1, b1, w2, b2))
    refb = bp_demo_reference(xb, w1, b1, w2, b2)
    assert outb.shape == (300, 1), outb.shape
    assert jnp.allclose(outb, refb, atol=1e-6, rtol=1e-6)

    print("KERNEL_OK")
</pallas_src>

<mosaic_0001>
module attributes {stable_mosaic.version = 11 : i64} {
  func.func @bp_demo_kernel(%arg0: i32, %arg1: memref<11xf32, #tpu.memory_space<smem>>, %arg2: memref<3x1x128xf32, #tpu.memory_space<vmem>>, %arg3: memref<1x128xf32, #tpu.memory_space<vmem>>) attributes {dimension_semantics = [#tpu.dimension_semantics<parallel>], iteration_bounds = array<i64: 1>, scalar_prefetch = 0 : i64, scratch_operands = 0 : i64, tpu.core_type = #tpu.core_type<tc>, window_params = [{transform_indices = @transform_0, window_bounds = array<i64: 11>}, {transform_indices = @transform_1, window_bounds = array<i64: 3, 1, 128>}, {transform_indices = @transform_2, window_bounds = array<i64: 1, 128>}]} {
    %c0 = arith.constant 0 : index
    %c0_0 = arith.constant 0 : index
    %c0_1 = arith.constant 0 : index
    %0 = vector.load %arg2[%c0, %c0_0, %c0_1] : memref<3x1x128xf32, #tpu.memory_space<vmem>>, vector<1x1x128xf32>
    %1 = vector.shape_cast %0 : vector<1x1x128xf32> to vector<1x128xf32>
    %c1 = arith.constant 1 : index
    %c0_2 = arith.constant 0 : index
    %c0_3 = arith.constant 0 : index
    %2 = vector.load %arg2[%c1, %c0_2, %c0_3] : memref<3x1x128xf32, #tpu.memory_space<vmem>>, vector<1x1x128xf32>
    %3 = vector.shape_cast %2 : vector<1x1x128xf32> to vector<1x128xf32>
    %c2 = arith.constant 2 : index
    %c0_4 = arith.constant 0 : index
    %c0_5 = arith.constant 0 : index
    %4 = vector.load %arg2[%c2, %c0_4, %c0_5] : memref<3x1x128xf32, #tpu.memory_space<vmem>>, vector<1x1x128xf32>
    %5 = vector.shape_cast %4 : vector<1x1x128xf32> to vector<1x128xf32>
    %c0_6 = arith.constant 0 : index
    %6 = memref.load %arg1[%c0_6] : memref<11xf32, #tpu.memory_space<smem>>
    %7 = vector.broadcast %6 : f32 to vector<1x128xf32>
    %8 = arith.mulf %7, %1 : vector<1x128xf32>
    %c1_7 = arith.constant 1 : index
    %9 = memref.load %arg1[%c1_7] : memref<11xf32, #tpu.memory_space<smem>>
    %10 = vector.broadcast %9 : f32 to vector<1x128xf32>
    %11 = arith.mulf %10, %3 : vector<1x128xf32>
    %12 = arith.addf %8, %11 : vector<1x128xf32>
    %c2_8 = arith.constant 2 : index
    %13 = memref.load %arg1[%c2_8] : memref<11xf32, #tpu.memory_space<smem>>
    %14 = vector.broadcast %13 : f32 to vector<1x128xf32>
    %15 = arith.mulf %14, %5 : vector<1x128xf32>
    %16 = arith.addf %12, %15 : vector<1x128xf32>
    %c6 = arith.constant 6 : index
    %17 = memref.load %arg1[%c6] : memref<11xf32, #tpu.memory_space<smem>>
    %18 = vector.broadcast %17 : f32 to vector<1x128xf32>
    %19 = arith.addf %16, %18 : vector<1x128xf32>
    %20 = math.absf %19 : vector<1x128xf32>
    %cst = arith.constant 0.000000e+00 : f32
    %21 = vector.broadcast %cst : f32 to vector<1x128xf32>
    %22 = arith.subf %21, %20 : vector<1x128xf32>
    %23 = math.exp %22 : vector<1x128xf32>
    %cst_9 = arith.constant 0.000000e+00 : f32
    %24 = vector.broadcast %cst_9 : f32 to vector<1x128xf32>
    %25 = arith.cmpf oge, %19, %24 : vector<1x128xf32>
    %cst_10 = arith.constant 1.000000e+00 : f32
    %26 = vector.broadcast %cst_10 : f32 to vector<1x128xf32>
    %27 = arith.addf %26, %23 : vector<1x128xf32>
    %cst_11 = arith.constant 1.000000e+00 : f32
    %28 = vector.broadcast %cst_11 : f32 to vector<1x128xf32>
    %29 = arith.divf %28, %27 : vector<1x128xf32>
    %cst_12 = arith.constant 1.000000e+00 : f32
    %30 = vector.broadcast %cst_12 : f32 to vector<1x128xf32>
    %31 = arith.addf %30, %23 : vector<1x128xf32>
    %32 = arith.divf %23, %31 : vector<1x128xf32>
    %33 = arith.select %25, %29, %32 : vector<1x128xi1>, vector<1x128xf32>
    %c3 = arith.constant 3 : index
    %34 = memref.load %arg1[%c3] : memref<11xf32, #tpu.memory_space<smem>>
    %35 = vector.broadcast %34 : f32 to vector<1x128xf32>
    %36 = arith.mulf %35, %1 : vector<1x128xf32>
    %c4 = arith.constant 4 : index
    %37 = memref.load %arg1[%c4] : memref<11xf32, #tpu.memory_space<smem>>
    %38 = vector.broadcast %37 : f32 to vector<1x128xf32>
    %39 = arith.mulf %38, %3 : vector<1x128xf32>
    %40 = arith.addf %36, %39 : vector<1x128xf32>
    %c5 = arith.constant 5 : index
    %41 = memref.load %arg1[%c5] : memref<11xf32, #tpu.memory_space<smem>>
    %42 = vector.broadcast %41 : f32 to vector<1x128xf32>
    %43 = arith.mulf %42, %5 : vector<1x128xf32>
    %44 = arith.addf %40, %43 : vector<1x128xf32>
    %c7 = arith.constant 7 : index
    %45 = memref.load %arg1[%c7] : memref<11xf32, #tpu.memory_space<smem>>
    %46 = vector.broadcast %45 : f32 to vector<1x128xf32>
    %47 = arith.addf %44, %46 : vector<1x128xf32>
    %48 = math.absf %47 : vector<1x128xf32>
    %cst_13 = arith.constant 0.000000e+00 : f32
    %49 = vector.broadcast %cst_13 : f32 to vector<1x128xf32>
    %50 = arith.subf %49, %48 : vector<1x128xf32>
    %51 = math.exp %50 : vector<1x128xf32>
    %cst_14 = arith.constant 0.000000e+00 : f32
    %52 = vector.broadcast %cst_14 : f32 to vector<1x128xf32>
    %53 = arith.cmpf oge, %47, %52 : vector<1x128xf32>
    %cst_15 = arith.constant 1.000000e+00 : f32
    %54 = vector.broadcast %cst_15 : f32 to vector<1x128xf32>
    %55 = arith.addf %54, %51 : vector<1x128xf32>
    %cst_16 = arith.constant 1.000000e+00 : f32
    %56 = vector.broadcast %cst_16 : f32 to vector<1x128xf32>
    %57 = arith.divf %56, %55 : vector<1x128xf32>
    %cst_17 = arith.constant 1.000000e+00 : f32
    %58 = vector.broadcast %cst_17 : f32 to vector<1x128xf32>
    %59 = arith.addf %58, %51 : vector<1x128xf32>
    %60 = arith.divf %51, %59 : vector<1x128xf32>
    %61 = arith.select %53, %57, %60 : vector<1x128xi1>, vector<1x128xf32>
    %c8 = arith.constant 8 : index
    %62 = memref.load %arg1[%c8] : memref<11xf32, #tpu.memory_space<smem>>
    %63 = vector.broadcast %62 : f32 to vector<1x128xf32>
    %64 = arith.mulf %63, %33 : vector<1x128xf32>
    %c9 = arith.constant 9 : index
    %65 = memref.load %arg1[%c9] : memref<11xf32, #tpu.memory_space<smem>>
    %66 = vector.broadcast %65 : f32 to vector<1x128xf32>
    %67 = arith.mulf %66, %61 : vector<1x128xf32>
    %68 = arith.addf %64, %67 : vector<1x128xf32>
    %c10 = arith.constant 10 : index
    %69 = memref.load %arg1[%c10] : memref<11xf32, #tpu.memory_space<smem>>
    %70 = vector.broadcast %69 : f32 to vector<1x128xf32>
    %71 = arith.addf %68, %70 : vector<1x128xf32>
    %72 = math.absf %71 : vector<1x128xf32>
    %cst_18 = arith.constant 0.000000e+00 : f32
    %73 = vector.broadcast %cst_18 : f32 to vector<1x128xf32>
    %74 = arith.subf %73, %72 : vector<1x128xf32>
    %75 = math.exp %74 : vector<1x128xf32>
    %cst_19 = arith.constant 0.000000e+00 : f32
    %76 = vector.broadcast %cst_19 : f32 to vector<1x128xf32>
    %77 = arith.cmpf oge, %71, %76 : vector<1x128xf32>
    %cst_20 = arith.constant 1.000000e+00 : f32
    %78 = vector.broadcast %cst_20 : f32 to vector<1x128xf32>
    %79 = arith.addf %78, %75 : vector<1x128xf32>
    %cst_21 = arith.constant 1.000000e+00 : f32
    %80 = vector.broadcast %cst_21 : f32 to vector<1x128xf32>
    %81 = arith.divf %80, %79 : vector<1x128xf32>
    %cst_22 = arith.constant 1.000000e+00 : f32
    %82 = vector.broadcast %cst_22 : f32 to vector<1x128xf32>
    %83 = arith.addf %82, %75 : vector<1x128xf32>
    %84 = arith.divf %75, %83 : vector<1x128xf32>
    %85 = arith.select %77, %81, %84 : vector<1x128xi1>, vector<1x128xf32>
    %c0_23 = arith.constant 0 : index
    %c0_24 = arith.constant 0 : index
    %86 = vector.load %arg3[%c0_23, %c0_24] : memref<1x128xf32, #tpu.memory_space<vmem>>, vector<1x128xf32>
    tpu.vector_store %arg3[%c0_23, %c0_24], %85 {strides = array<i32>} : memref<1x128xf32, #tpu.memory_space<vmem>>, vector<1x128xf32>,
    return
  }
  func.func @transform_0(%arg0: i32) -> i32 {
    %c0_i32 = arith.constant 0 : i32
    %c0_i32_0 = arith.constant 0 : i32
    return %c0_i32 : i32
  }
  func.func @transform_1(%arg0: i32) -> (i32, i32, i32) {
    %c0_i32 = arith.constant 0 : i32
    %c0_i32_0 = arith.constant 0 : i32
    %c0_i32_1 = arith.constant 0 : i32
    return %c0_i32, %arg0, %c0_i32_0 : i32, i32, i32
  }
  func.func @transform_2(%arg0: i32) -> (i32, i32) {
    %c0_i32 = arith.constant 0 : i32
    %c0_i32_0 = arith.constant 0 : i32
    return %arg0, %c0_i32 : i32, i32
  }
}

</mosaic_0001>

<bundles_post_ra>
// kernel: bp_demo_forward_channels_first.1
= control target key start
LH: loop header
LB: loop body
LE: loop exit
PB: predicated region body
PF: predicated region fallthrough
CT: control target
= control target key end

     0   :  { %7 = vsyncpa [#allocation3], 0  ;;  %s173_s0 = inlined_call_operand.vmem [shape: f32[11], index: 0, kind: input, shape index: {}]   ;;  %s174_s1 = inlined_call_operand.vmem [shape: f32[3,1,128], index: 1, kind: input, shape index: {}]   ;;  %s175_s2 = inlined_call_operand.vmem [shape: f32[1,128], index: 2, kind: output, shape index: {}]  }
   0x1   :  { %s14_s11 = sshll.u32 %s173_s0, 4  ;;  %s15_s11 = int_to_ptr.vmem [resolvable:$true] %s14_s11 }
   0x2   :  { %s128_s12 = scalar_lea.vmem %s15_s11, 16  ;;  %p133_p1 = scmp.lt.s32.totalorder %s15_s11, %s15_s11 }
   0x3   :  { %p129_p0 = scmp.ne.s32.totalorder %s15_s11, %s128_s12  ;;  %p134_p2 = scmp.lt.s32.totalorder %s128_s12, %s128_s12 }
   0x5   :  { %p135_p3 = por %p134_p2, %p133_p1 }
   0x7   :  { %p136_p4 = pnand %p135_p3, %p129_p0 }
   0x9   :  { %139 = shalt.err (!%p136_p4)
}
   0xa   :  { %s142_s13 = smov [#allocation2]  }
   0xb   :  { %17 = dma.vmem_to_smem %s15_s11, 16, %s142_s13, [#allocation3]  }
   0xc   :  { %140 = dma.done.wait [#allocation3], 16  }
   0xd   :  { %141 = vsyncadd [#allocation3], 4294967280 }
   0xe   :  { %23 = sfence }
   0xf   :  { %s29_s14 = sld [smem:[#allocation2]]  ;;  %v24_v0 = vld [vmem:[%s174_s1] sm:$0x1]  ;;  %v103_v1 = vld [vmem:[%s174_s1 + $0x1] sm:$0x1] }
  0x10   :  { %s105_s15 = sld [smem:[#allocation2 + $0x1]]  ;;  %v104_v2 = vld [vmem:[%s174_s1 + $0x2] sm:$0x1] }
  0x11   :  { %s106_s16 = sld [smem:[#allocation2 + $0x2]] }
  0x12   :  { %s107_s17 = sld [smem:[#allocation2 + $0x6]] }
  0x13   :  { %s108_s0 = sld [smem:[#allocation2 + $0x3]] }
  0x14   :  { %s109_s22 = sld [smem:[#allocation2 + $0x4]] }
  0x15   :  { %v30_v3 = vstv %s29_s14  ;;  %s110_s25 = sld [smem:[#allocation2 + $0x5]] }
  0x16   :  { %v31_v4 = vmul.f32 %v30_v3, %v24_v0  ;;  %v33_v5 = vstv %s105_s15  ;;  %s111_s26 = sld [smem:[#allocation2 + $0x7]] }
  0x17   :  { %v34_v6 = vmul.f32 %v103_v1, %v33_v5  ;;  %v37_v7 = vstv %s106_s16  ;;  %s112_s1 = sld [smem:[#allocation2 + $0x8]] }
  0x18   :  { %v38_v8 = vmul.f32 %v104_v2, %v37_v7  ;;  %v41_v11 = vstv %s107_s17  ;;  %s113_s27 = sld [smem:[#allocation2 + $0x9]] }
  0x19   :  { %v35_v9 = vadd.f32 %v34_v6, %v31_v4  ;;  %v54_v10 = vstv %s108_s0  ;;  %s114_s28 = sld [smem:[#allocation2 + $0xa]] }
  0x1a   :  { %v55_v12 = vmul.f32 %v54_v10, %v24_v0  ;;  %v57_v13 = vstv %s109_s22 }
  0x1b   :  { %v39_v14 = vadd.f32 %v38_v8, %v35_v9  ;;  %v58_v15 = vmul.f32 %v103_v1, %v57_v13  ;;  %v61_v16 = vstv %s110_s25 }
  0x1c   :  { %v62_v17 = vmul.f32 %v104_v2, %v61_v16  ;;  %v65_v20 = vstv %s111_s26 }
  0x1d   :  { %v42_v18 = vadd.f32 %v41_v11, %v39_v14  ;;  %v59_v19 = vadd.f32 %v58_v15, %v55_v12  ;;  %v78_v36 = vstv %s112_s1 }
  0x1e   :  { %v81_v39 = vstv %s113_s27 }
  0x1f   :  { %v43_v21 = vand.u32 2147483647, %v42_v18  ;;  %v63_v22 = vadd.f32 %v62_v17, %v59_v19  ;;  %vm47_vm0 = vcmp.ge.f32.partialorder %v42_v18, 0.0  ;;  %v85_v43 = vstv %s114_s28 }
  0x21   :  { %v44_v23 = vsub.f32 0.0, %v43_v21  ;;  %v66_v24 = vadd.f32 %v65_v20, %v63_v22 }
  0x23   :  { %v45_v25 = vmul.f32 1.442695, %v44_v23  ;;  %v67_v26 = vand.u32 2147483647, %v66_v24  ;;  %vm71_vm1 = vcmp.ge.f32.partialorder %v66_v24, 0.0 }
  0x25   :  { %116 = vpow2.f32 %v45_v25  ;;  %v68_v27 = vsub.f32 0.0, %v67_v26 }
  0x27   :  { %v69_v28 = vmul.f32 1.442695, %v68_v27 }
  0x29   :  { %118 = vpow2.f32 %v69_v28 }
  0x32   :  { %v117_v29 = vpop.eup %116 }
  0x33   :  { %v48_v30 = vadd.f32 1.0, %v117_v29 }
  0x35   :  { %120 = vrcp.f32 %v48_v30 }
  0x36   :  { %v119_v31 = vpop.eup %118 }
  0x37   :  { %v72_v32 = vadd.f32 1.0, %v119_v31 }
  0x39   :  { %122 = vrcp.f32 %v72_v32 }
  0x42   :  { %v121_v33 = vpop.eup %120 }
  0x43   :  { %v51_v34 = vmul.f32 %v121_v33, %v117_v29 }
  0x45   :  { %v52_v35 = vsel %vm47_vm0, %v121_v33, %v51_v34 }
  0x46   :  { %v123_v37 = vpop.eup %122  ;;  %v79_v40 = vmul.f32 %v78_v36, %v52_v35 }
  0x47   :  { %v75_v38 = vmul.f32 %v123_v37, %v119_v31 }
  0x49   :  { %v76_v41 = vsel %vm71_vm1, %v123_v37, %v75_v38 }
  0x4a   :  { %v82_v42 = vmul.f32 %v81_v39, %v76_v41 }
  0x4c   :  { %v83_v44 = vadd.f32 %v82_v42, %v79_v40 }
  0x4e   :  { %v86_v45 = vadd.f32 %v85_v43, %v83_v44 }
  0x50   :  { %v87_v46 = vand.u32 2147483647, %v86_v45  ;;  %vm91_vm2 = vcmp.ge.f32.partialorder %v86_v45, 0.0 }
  0x52   :  { %v88_v47 = vsub.f32 0.0, %v87_v46 }
  0x54   :  { %v89_v48 = vmul.f32 1.442695, %v88_v47 }
  0x56   :  { %124 = vpow2.f32 %v89_v48 }
  0x63   :  { %v125_v49 = vpop.eup %124 }
  0x64   :  { %v92_v50 = vadd.f32 1.0, %v125_v49 }
  0x66   :  { %126 = vrcp.f32 %v92_v50 }
  0x73   :  { %v127_v51 = vpop.eup %126 }
  0x74   :  { %v95_v52 = vmul.f32 %v127_v51, %v125_v49 }
  0x76   :  { %v96_v53 = vsel %vm91_vm2, %v127_v51, %v95_v52 }
  0x77   :  { %97 = vst [vmem:[%s175_s2] sm:$0x1] %v96_v53 }
  0x78   :  { %102 = vsyncpa [#allocation3], 1 }

</bundles_post_ra>
